<compile_context>
chip_gen: v5e
topology: v5e:2x2
jax: 0.10.0
libtpu: 0.0.40
codegen_flags: <defaults>
</compile_context>

<pallas_src>
import math

import jax
import jax.numpy as jnp
from jax.experimental import pallas as pl
from jax.experimental.pallas import tpu as pltpu


def _make_kernel(margin):
    # log(x / margin) == log(x) - log(margin); the subtraction is a free
    # constant add (skipped entirely when margin == 1) and is numerically
    # closer to the reference than log(x * (1/margin)).
    log_margin = math.log(float(margin))

    def kernel(x_ref, o_ref):
        x = x_ref[...].astype(jnp.float32)      # cast in vregs only
        y = jnp.log(x)                          # EUP
        if log_margin != 0.0:
            y = y - jnp.float32(log_margin)
        o_ref[...] = jnp.maximum(y, jnp.float32(0.0)).astype(o_ref.dtype)

    return kernel


def _choose_layout(n, itemsize):
    """Pick (slab_width, rows, block_rows) for a flat elementwise stream."""
    # Lane-dense slab width (last dim maps to the 128-lane axis). Wider =
    # longer unmasked stores / contiguous DMA bursts. Fall back for tiny
    # inputs so we never over-pad.
    for width in (2048, 1024, 512, 256, 128):
        if n >= 8 * width:
            break
    rows = -(-n // width)

    # ~2 MiB per block in the *native* dtype: big enough to sit near the HBM
    # roofline, small enough that (in + out) x 2 double-buffers ~= 8 MiB VMEM,
    # which fits v5e's 16 MiB scoped default and v7x's 64 MiB physical VMEM.
    target_block_bytes = 2 << 20
    block_rows = max(8, (target_block_bytes // (width * itemsize)) // 8 * 8)
    if rows <= block_rows:
        block_rows = rows  # single block == full array dims (always legal)
    return width, rows, block_rows


def relu_log_plus_positive_loss(x, margin=1.0):
    """Elementwise relu(log(x / margin)) via a Pallas TPU kernel.

    Works for any shape / floating dtype; I/O stays in x.dtype.
    """
    orig_shape = x.shape
    dtype = x.dtype
    n = x.size
    if n == 0:
        return x

    itemsize = jnp.dtype(dtype).itemsize
    width, rows, block_rows = _choose_layout(n, itemsize)

    # Flatten to a lane-dense (rows, width) slab. Reshape of a contiguous
    # array is layout plumbing, not an HBM pass.
    x_flat = x.reshape(-1)
    pad = rows * width - n
    if pad:
        # Pad with 1.0 so relu(log(1)) == 0 in the (discarded) tail; only one
        # fusable jnp.pad, and only when the size is not width-aligned.
        x_flat = jnp.pad(x_flat, (0, pad), constant_values=1.0)
    x2d = x_flat.reshape(rows, width)

    grid = (pl.cdiv(rows, block_rows),)

    out2d = pl.pallas_call(
        _make_kernel(margin),
        out_shape=jax.ShapeDtypeStruct((rows, width), dtype),
        grid_spec=pltpu.PrefetchScalarGridSpec(
            num_scalar_prefetch=0,
            grid=grid,
            in_specs=[pl.BlockSpec((block_rows, width), lambda i: (i, 0))],
            out_specs=pl.BlockSpec((block_rows, width), lambda i: (i, 0)),
        ),
        compiler_params=pltpu.CompilerParams(
            dimension_semantics=("parallel",),   # shards across v7x's 2 TCs
            vmem_limit_bytes=32 << 20,           # headroom; usage ~8 MiB
        ),
    )(x2d)

    out = out2d.reshape(-1)
    if pad:
        out = out[:n]
    return out.reshape(orig_shape)


def _reference(x, margin=1.0):
    return jnp.maximum(jnp.log(x / margin), 0.0)


if __name__ == "__main__":
    key = jax.random.PRNGKey(0)
    # NCHW activations, strictly positive (log requires positive input).
    x = jax.random.uniform(
        key, (2, 4, 16, 16), dtype=jnp.float32, minval=0.1, maxval=4.0
    )

    margin = 1.0
    out = relu_log_plus_positive_loss(x, margin=margin)
    out = jax.block_until_ready(out)

    ref = _reference(x, margin)
    assert out.shape == x.shape and out.dtype == x.dtype
    assert jnp.allclose(out, ref, atol=1e-5, rtol=1e-5), "mismatch vs reference"

    print("KERNEL_OK")
</pallas_src>

<mosaic_0001>
module attributes {stable_mosaic.version = 11 : i64} {
  func.func @kernel(%arg0: i32, %arg1: memref<8x256xf32, #tpu.memory_space<vmem>>, %arg2: memref<8x256xf32, #tpu.memory_space<vmem>>) attributes {dimension_semantics = [#tpu.dimension_semantics<parallel>], iteration_bounds = array<i64: 1>, scalar_prefetch = 0 : i64, scratch_operands = 0 : i64, tpu.core_type = #tpu.core_type<tc>, window_params = [{transform_indices = @transform_0, window_bounds = array<i64: 8, 256>}, {transform_indices = @transform_1, window_bounds = array<i64: 8, 256>}]} {
    %c0 = arith.constant 0 : index
    %c0_0 = arith.constant 0 : index
    %0 = vector.load %arg1[%c0, %c0_0] : memref<8x256xf32, #tpu.memory_space<vmem>>, vector<8x256xf32>
    %1 = math.log %0 : vector<8x256xf32>
    %cst = arith.constant 0.000000e+00 : f32
    %2 = vector.broadcast %cst : f32 to vector<8x256xf32>
    %3 = arith.maximumf %1, %2 : vector<8x256xf32>
    %c0_1 = arith.constant 0 : index
    %c0_2 = arith.constant 0 : index
    %4 = vector.load %arg2[%c0_1, %c0_2] : memref<8x256xf32, #tpu.memory_space<vmem>>, vector<8x256xf32>
    tpu.vector_store %arg2[%c0_1, %c0_2], %3 {strides = array<i32>} : memref<8x256xf32, #tpu.memory_space<vmem>>, vector<8x256xf32>,
    return
  }
  func.func @transform_0(%arg0: i32) -> (i32, i32) {
    %c0_i32 = arith.constant 0 : i32
    %c0_i32_0 = arith.constant 0 : i32
    return %arg0, %c0_i32 : i32, i32
  }
  func.func @transform_1(%arg0: i32) -> (i32, i32) {
    %c0_i32 = arith.constant 0 : i32
    %c0_i32_0 = arith.constant 0 : i32
    return %arg0, %c0_i32 : i32, i32
  }
}

</mosaic_0001>

<bundles_post_ra>
// kernel: tpu_custom_call.1
= control target key start
LH: loop header
LB: loop body
LE: loop exit
PB: predicated region body
PF: predicated region fallthrough
CT: control target
= control target key end

     0   :  { %6 = vsyncpa [#allocation3], 0  ;;  %s126_s0 = inlined_call_operand.hbm [shape: f32[8,256], index: 0, kind: input, shape index: {}]   ;;  %s127_s1 = inlined_call_operand.hbm [shape: f32[8,256], index: 1, kind: output, shape index: {}]  }
   0x1   :  { %7 = vsyncpa [#allocation4], 0  ;;  %s13_s8 = sshll.u32 %s126_s0, 4  ;;  %s108_s9 = smov [#allocation2]   ;;  %s14_s8 = int_to_ptr.hbm [resolvable:$true] %s13_s8 }
   0x2   :  { %s15_s10 = sshll.u32 %s108_s9, 4  ;;  %s16_s10 = int_to_ptr.vmem [resolvable:$true] %s15_s10 }
   0x3   :  { %18 = dma.hbm_to_vmem [thread:$0]  %s14_s8, 256, %s16_s10, [#allocation3]  }
   0x4   :  { %104 = dma.done.wait [#allocation3], 256  }
   0x5   :  { %105 = vsyncadd [#allocation3], 4294967040  ;;  %v23_v0 = vld [vmem:[#allocation2] sm:$0xff]  ;;  %v24_v1 = vld [vmem:[#allocation2 + $0x8] sm:$0xff]  ;;  %s109_s11 = smov [#allocation5]   ;;  %s40_s0 = sshll.u32 %s127_s1, 4  ;;  %s41_s0 = int_to_ptr.hbm [resolvable:$true] %s40_s0 }
   0x6   :  { %52 = vlog2.f32 %v23_v0  ;;  %s38_s12 = sshll.u32 %s109_s11, 4  ;;  %s39_s12 = int_to_ptr.vmem [resolvable:$true] %s38_s12 }
   0x7   :  { %54 = vlog2.f32 %v24_v1 }
   0xc   :  { %v53_v2 = vpop.eup %52 }
   0xd   :  { %v55_v3 = vpop.eup %54  ;;  %v26_v4 = vmul.f32 0.6931472, %v53_v2 }
   0xe   :  { %v28_v5 = vmul.f32 0.6931472, %v55_v3 }
   0xf   :  { %v29_v6 = vmax.f32 %v26_v4, 0.0 }
  0x10   :  { %v30_v7 = vmax.f32 %v28_v5, 0.0 }
  0x11   :  { %31 = vst [vmem:[#allocation5] sm:$0xff] %v29_v6 }
  0x12   :  { %32 = vst [vmem:[#allocation5 + $0x8] sm:$0xff] %v30_v7 }
  0x13   :  { %43 = dma.vmem_to_hbm [thread:$0]  %s39_s12, 256, %s41_s0, [#allocation4]  }
  0x14   :  { %106 = dma.done.wait [#allocation4], 256  }
  0x15   :  { %107 = vsyncadd [#allocation4], 4294967040 }
  0x16   :  { %48 = vsyncpa [#allocation3], 1 }
  0x17   :  { %49 = vsyncpa [#allocation4], 1 }

</bundles_post_ra>
